<compile_context>
chip_gen: v6e
topology: v6e:2x2x1
jax: 0.10.0
libtpu: 0.0.40
codegen_flags: <defaults>
</compile_context>

<pallas_src>
import numpy as np
import jax
import jax.numpy as jnp
from jax.experimental import pallas as pl
from jax.experimental.pallas import tpu as pltpu


_LANES = 128
_TARGET_BLOCK_BYTES = 8 * 1024 * 1024    # ~8 MiB/block; 4 bufs -> 32 MiB VMEM (fits v7x)
_PALLAS_MIN_BYTES = 1 * 1024 * 1024      # below this, plain XLA copy beats kernel launch
_SPLIT_THRESHOLD_BYTES = 2 * 1024 * 1024 # above this, force multiple grid steps
_MIN_GRID_STEPS = 4                      # 2 TCs (v7x) x double-buffer overlap


# ----------------------------- shape helpers -----------------------------
def _infer_shape(known, with_minus_one):
    """Infer the -1 entry of `with_minus_one` from the fully-known shape `known`."""
    assert -1 not in known
    total_known = int(np.prod(known))
    total_other = -int(np.prod(with_minus_one))
    assert total_known % total_other == 0
    out = list(with_minus_one)
    out[out.index(-1)] = total_known // total_other
    return tuple(out)


def _sublane_pack(dtype):
    """Rows per packed sublane group: 8 for 4-byte, 16 for 2-byte, 32 for 1-byte."""
    return max(8, 32 // jnp.dtype(dtype).itemsize)


# ----------------------------- Pallas kernel -----------------------------
def _copy_kernel(x_ref, o_ref):
    # Pure element copy of one (TILE_R, 128) lane/sublane-dense tile.
    o_ref[...] = x_ref[...]


def _pallas_materialize_copy(flat):
    """Identity copy of a 128-aligned 1-D array through a Pallas kernel.

    Precondition: flat.size % 128 == 0 and flat.nbytes >= _PALLAS_MIN_BYTES.
    Returns a fresh (non-aliased) array with the same contents.
    """
    (n,) = flat.shape
    assert n % _LANES == 0
    itemsize = jnp.dtype(flat.dtype).itemsize
    pack = _sublane_pack(flat.dtype)

    rows = n // _LANES
    x2d = jnp.reshape(flat, (rows, _LANES))          # metadata-only bitcast
    bytes_per_row = _LANES * itemsize

    # Largest sublane-dense tile that stays under the target block size.
    max_rows = max(pack, (_TARGET_BLOCK_BYTES // bytes_per_row) // pack * pack)
    tile_r = rows if rows <= max_rows else max_rows

    # For mid/large tensors, force several grid steps so both TCs on v7x get
    # work and the pipeline actually overlaps prefetch/writeback.
    if rows * bytes_per_row >= _SPLIT_THRESHOLD_BYTES:
        cap = pl.cdiv(rows, _MIN_GRID_STEPS)
        cap = max(pack, -(-cap // pack) * pack)      # round up to sublane packing
        tile_r = min(tile_r, cap)

    grid = (pl.cdiv(rows, tile_r),)
    block_bytes = tile_r * bytes_per_row
    # 2 double-buffered input blocks + 2 output blocks + slack; fits every gen.
    vmem_limit = max(32 * 1024 * 1024, 4 * block_bytes + 4 * 1024 * 1024)

    y2d = pl.pallas_call(
        _copy_kernel,
        out_shape=jax.ShapeDtypeStruct((rows, _LANES), flat.dtype),
        grid_spec=pltpu.PrefetchScalarGridSpec(
            num_scalar_prefetch=0,
            grid=grid,
            in_specs=[pl.BlockSpec((tile_r, _LANES), lambda i: (i, 0))],
            out_specs=pl.BlockSpec((tile_r, _LANES), lambda i: (i, 0)),
        ),
        compiler_params=pltpu.CompilerParams(
            dimension_semantics=("parallel",),       # shards across both TCs on v7x
            vmem_limit_bytes=vmem_limit,
        ),
        cost_estimate=pl.CostEstimate(
            flops=0,
            transcendentals=0,
            bytes_accessed=2 * rows * _LANES * itemsize,
        ),
    )(x2d)

    return jnp.reshape(y2d, (n,))


def view_forward(x, output_shape, materialize=False):
    """Equivalent of x.view(x.shape[0], *output_shape)."""
    B = x.shape[0]
    flat = int(np.prod(x.shape[1:])) if x.ndim > 1 else 1
    assert flat == int(np.prod(output_shape)), "element count mismatch"

    if not materialize:
        # A view is a pure metadata op: free row-major reshape, zero HBM traffic.
        return jnp.reshape(x, (B,) + tuple(output_shape))

    # Explicit materialization path: produce a fresh contiguous copy.
    n = B * flat
    flat_all = jnp.reshape(x, (n,))                  # metadata-only
    nbytes = n * jnp.dtype(x.dtype).itemsize
    if n % _LANES != 0 or nbytes < _PALLAS_MIN_BYTES:
        # Tiny or 128-misaligned tensors: one XLA copy pass (already the HBM
        # roofline); avoids kernel launch overhead / pad round trips.
        y = jnp.copy(flat_all)
    else:
        y = _pallas_materialize_copy(flat_all)
    return jnp.reshape(y, (B,) + tuple(output_shape))


# ----------------------------- module wrapper -----------------------------
class View:
    """JAX/Pallas port of tml.module.view.View (per-sample reshape)."""

    def __init__(self, input_shape, output_shape):
        self.input_shape = tuple(input_shape)
        self.output_shape = tuple(output_shape)
        if -1 in self.output_shape:
            self.output_shape = _infer_shape(self.input_shape, self.output_shape)
        if -1 in self.input_shape:
            self.input_shape = _infer_shape(self.output_shape, self.input_shape)
        assert int(np.prod(self.input_shape)) == int(np.prod(self.output_shape))

    def __call__(self, x, materialize=False):
        return view_forward(x, self.output_shape, materialize=materialize)

    def shape(self, *args, **kwargs):
        return self.output_shape

    def inverse(self, **kwargs):
        return View(self.output_shape, self.input_shape)

    def __repr__(self):
        return "View({0}->{1})".format(self.input_shape, self.output_shape)


# ----------------------------- demo / test -----------------------------
if __name__ == "__main__":
    key = jax.random.PRNGKey(0)
    k_small, k_big = jax.random.split(key)

    # --- Small case: metadata-only path + tiny-tensor XLA-copy fallback. ---
    B, C, H, W = 2, 4, 16, 16
    x_small = jax.random.normal(k_small, (B, C, H, W), dtype=jnp.float32)
    view_small = View(input_shape=(C, H, W), output_shape=(8, -1))   # -> (8, 128)

    y_fast = jax.block_until_ready(view_small(x_small))
    y_small_mat = jax.block_until_ready(view_small(x_small, materialize=True))

    ref_small = np.asarray(x_small).reshape(B, 8, 128)
    assert y_fast.shape == (B, 8, 128), y_fast.shape
    assert y_small_mat.shape == (B, 8, 128), y_small_mat.shape
    assert y_fast.dtype == x_small.dtype and y_small_mat.dtype == x_small.dtype
    np.testing.assert_array_equal(np.asarray(y_fast), ref_small)
    np.testing.assert_array_equal(np.asarray(y_small_mat), ref_small)

    # --- Larger case (4 MiB f32): exercises the Pallas copy kernel with a
    #     multi-step, TC-parallel grid (8192 rows -> 4 blocks of 2048x128). ---
    S, D = 512, 1024
    x_big = jax.random.normal(k_big, (B, S, D), dtype=jnp.float32)
    view_big = View(input_shape=(S, D), output_shape=(-1, 512))      # -> (1024, 512)

    y_big_fast = jax.block_until_ready(view_big(x_big))
    y_big_mat = jax.block_until_ready(view_big(x_big, materialize=True))

    ref_big = np.asarray(x_big).reshape(B, 1024, 512)
    assert y_big_fast.shape == (B, 1024, 512), y_big_fast.shape
    assert y_big_mat.shape == (B, 1024, 512), y_big_mat.shape
    assert y_big_mat.dtype == x_big.dtype
    np.testing.assert_array_equal(np.asarray(y_big_fast), ref_big)
    np.testing.assert_array_equal(np.asarray(y_big_mat), ref_big)

    print("KERNEL_OK")
</pallas_src>

<mosaic_0001>
module attributes {stable_mosaic.version = 11 : i64} {
  func.func @_copy_kernel(%arg0: i32, %arg1: memref<2048x128xf32, #tpu.memory_space<vmem>>, %arg2: memref<2048x128xf32, #tpu.memory_space<vmem>>) attributes {dimension_semantics = [#tpu.dimension_semantics<parallel>], iteration_bounds = array<i64: 4>, scalar_prefetch = 0 : i64, scratch_operands = 0 : i64, tpu.core_type = #tpu.core_type<tc>, window_params = [{transform_indices = @transform_0, window_bounds = array<i64: 2048, 128>}, {transform_indices = @transform_1, window_bounds = array<i64: 2048, 128>}]} {
    %c0 = arith.constant 0 : index
    %c0_0 = arith.constant 0 : index
    %0 = vector.load %arg1[%c0, %c0_0] : memref<2048x128xf32, #tpu.memory_space<vmem>>, vector<2048x128xf32>
    %c0_1 = arith.constant 0 : index
    %c0_2 = arith.constant 0 : index
    %1 = vector.load %arg2[%c0_1, %c0_2] : memref<2048x128xf32, #tpu.memory_space<vmem>>, vector<2048x128xf32>
    tpu.vector_store %arg2[%c0_1, %c0_2], %0 {strides = array<i32>} : memref<2048x128xf32, #tpu.memory_space<vmem>>, vector<2048x128xf32>,
    return
  }
  func.func @transform_0(%arg0: i32) -> (i32, i32) {
    %c0_i32 = arith.constant 0 : i32
    %c0_i32_0 = arith.constant 0 : i32
    return %arg0, %c0_i32 : i32, i32
  }
  func.func @transform_1(%arg0: i32) -> (i32, i32) {
    %c0_i32 = arith.constant 0 : i32
    %c0_i32_0 = arith.constant 0 : i32
    return %arg0, %c0_i32 : i32, i32
  }
}

</mosaic_0001>

<bundles_post_ra>
// kernel: tpu_custom_call.1
= control target key start
LH: loop header
LB: loop body
LE: loop exit
PB: predicated region body
PF: predicated region fallthrough
CT: control target
= control target key end

     0   :  { %6 = vsyncpa [#allocation3], 0  ;;  %s1581_s0 = inlined_call_operand.hbm [shape: f32[8192,128], index: 0, kind: input, shape index: {}]   ;;  %s1582_s1 = inlined_call_operand.hbm [shape: f32[8192,128], index: 1, kind: output, shape index: {}]  }
   0x1   :  { %8 = vsyncpa [#allocation3 + $0x1], 0 }
   0x2   :  { %9 = vsyncpa [#allocation4], 0 }
   0x3   :  { %11 = vsyncpa [#allocation4 + $0x1], 0  ;;  %s912_s6 = smov 0   ;;  %s914_s7 = smov 0  }
   0x4   :  { %s916_s8 = smov 0   ;;  %s918_s9 = smov 0  }
   0x5 LB: > { %s933_s10 = sadd.s32 4294967295, %s894_s9   ;;  %s736_s11 = sadd.s32 4294967294, %s894_s9   ;;  %s894_s9 = sphi %s918_s9, %s1596_s9   ;;  %s890_s8 = sphi %s916_s8, %s1595_s8   ;;  %s886_s7 = sphi %s914_s7, %s1594_s7   ;;  %s882_s6 = sphi %s912_s6, %s1593_s6  }
   0x6   : > { %s937_s12 = sadd.s32 1, %s894_s9   ;;  %s24_s13 = sadd.s32 1, %s890_s8 }
   0x7   : > { %s21_s14 = ssub.s32 %s894_s9, %s937_s12  ;;  %p31_p0 = scmp.ne.s32.totalorder %s890_s8, %s886_s7 }
   0x8   : > { %p22_p1 = scmp.eq.s32.totalorder %s21_s14, 0  ;;  %p32_p2 = scmp.eq.s32.totalorder %s894_s9, 0 }
   0x9   : > { %p37_p3 = scmp.ne.s32.totalorder %s886_s7, %s882_s6  ;;  %p38_p4 = scmp.eq.s32.totalorder %s933_s10, 0 }
   0xa   : > { %s949_s15 = scalar_select %p22_p1, %s890_s8, %s24_s13  }
   0xb   : > { %p951_p5 = por %p32_p2, %p31_p0  ;;  %p955_p6 = por %p38_p4, %p37_p3 }
   0xc   : > { %p61_p7 = scmp.eq.s32.totalorder %s933_s10, 3  ;;  %p67_p8 = scmp.eq.s32.totalorder %s736_s11, 3 }
   0xd   : > { %s1586_s17 = scalar_select %p955_p6, 1, 0 }
   0xe   : > { %p764_p9 = scmp.lt.s32.totalorder %s894_s9, 4  ;;  %p961_p10 = por %p61_p7, %p31_p0 }
   0xf   : > { %p965_p11 = por %p67_p8, %p37_p3  ;;  %s87_s20 = sand.u32 1, %s890_s8  }
  0x10   : > { %s1587_s18 = scalar_select %p961_p10, 1, 0 }
  0x11   : > { %s1588_s19 = scalar_select %p965_p11, 1, 0 }
  0x12   : > { %s750_s21 = sshll.u32 %s894_s9, 15  ;;  %s739_s22 = sshll.u32 %s87_s20, 11 }
  0x13   : > { %s974_s25 = scalar_lea.hbm %s1581_s0, %s750_s21  ;;  %s91_s26 = scalar_lea.vmem [#allocation2], %s739_s22 }
  0x14   : > { %s98_s27 = sshll.u32 %s91_s26, 4  ;;  %p978_p12 = pnand %p764_p9, %p951_p5  ;;  %s982_s27 = int_to_ptr.vmem [resolvable:$true] %s98_s27 }
  0x15   : > { %s984_s29 = scalar_lea.sflag [#allocation3], %s87_s20  ;;  %s802_s30 = scalar_lea.hbm %s974_s25, 32768 }
  0x16   : > { %p803_p13 = scmp.ne.s32.totalorder %s974_s25, %s802_s30  ;;  %p804_p0 = pneg %p978_p12 }
  0x17   : > { %s807_s4 = scalar_lea.hbm %s1581_s0, 131072  ;;  %p808_p3 = scmp.lt.s32.totalorder %s974_s25, %s1581_s0 }
  0x18   : > { %p805_p1 = pnand %p804_p0, %p803_p13  ;;  %p809_p4 = scmp.lt.s32.totalorder %s807_s4, %s802_s30 }
  0x1a   : > { %p806_p2 = pneg %p805_p1  ;;  %p810_p5 = por %p809_p4, %p808_p3 }
  0x1c   : > { %p811_p7 = pnand %p810_p5, %p806_p2 }
  0x1e   : > { %814 = shalt.err (!%p811_p7)
}
  0x1f   : > { %s815_s13 = scalar_lea.vmem %s982_s27, 32768  ;;  %s896_s14 = smov [#allocation2]  }
  0x20   : > { %p816_p8 = scmp.ne.s32.totalorder %s982_s27, %s815_s13  ;;  %s820_s16 = sshll.u32 %s896_s14, 4  ;;  %s821_s16 = int_to_ptr.vmem [resolvable:$false] %s820_s16 }
  0x21   : > { %s822_s20 = scalar_lea.vmem %s821_s16, 65536  ;;  %p823_p1 = scmp.lt.s32.totalorder %s982_s27, %s821_s16 }
  0x22   : > { %p818_p9 = pnand %p816_p8, %p804_p0  ;;  %p824_p11 = scmp.lt.s32.totalorder %s822_s20, %s815_s13 }
  0x24   : > { %p819_p13 = pneg %p818_p9  ;;  %p825_p10 = por %p824_p11, %p823_p1 }
  0x26   : > { %p826_p6 = pnand %p825_p10, %p819_p13 }
  0x28   : > { %829 = shalt.err (!%p826_p6)
}
  0x29   : > { %s897_s21 = smov 128   ;;  %s898_s22 = smov 8  }
  0x2a   : > { %759 = dma.hbm_to_vmem [thread:$0]  (!%p978_p12), %s974_s25, 32768, %s982_s27, %s984_s29, %s897_s21, %s897_s21, %s898_s22  }
  0x2b   : > { %p742_p0 = scmp.ge.s32.totalorder %s894_s9, 1  ;;  %p106_p2 = scmp.lt.s32.totalorder %s894_s9, 5 }
  0x2d   : > { %p107_p3 = pnand %p742_p0, %p106_p2 }
  0x2e   : > { %s1008_s23 = sand.u32 (!%p107_p3), 1, %s886_s7   ;;  %p1590_p6 = scmp.ne.s32.totalorder (!%p107_p3), %s1586_s17, 0 }
  0x2f   : > { %110 = sbr.rel (%p107_p3) target bundleno = 195 (0xc3), region = 24  ;;  %s743_s24 = sshll.u32 (!%p107_p3), %s1008_s23, 11 }
  0x30   : > { %s113_s26 = scalar_lea.sflag (!%p107_p3), [#allocation3], %s1008_s23  ;;  %s1012_s30 = scalar_lea.vmem (!%p107_p3), [#allocation2], %s743_s24 }
  0x34   : > { %873 = dma.done.wait (%p1590_p6), %s113_s26, 32768  }
  0x35   : > { %875 = vsyncadd (%p1590_p6), %s113_s26, 4294934528  ;;  %v137_v0 = vld [vmem:[%s1012_s30] sm:$0xff]  ;;  %v138_v1 = vld [vmem:[%s1012_s30 + $0x8] sm:$0xff]  ;;  %s1021_s25 = scalar_lea.vmem [#allocation5], %s743_s24  ;;  %s751_s17 = sshll.u32 %s933_s10, 15 }
  0x36   : > { %v139_v2 = vld [vmem:[%s1012_s30 + $0x10] sm:$0xff]  ;;  %393 = vst [vmem:[%s1021_s25] sm:$0xff] %v137_v0  ;;  %394 = vst [vmem:[%s1021_s25 + $0x8] sm:$0xff] %v138_v1  ;;  %v140_v3 = vld [vmem:[%s1012_s30 + $0x18] sm:$0xff]  ;;  %s663_s27 = sshll.u32 %s1021_s25, 4  ;;  %s1526_s29 = scalar_lea.hbm %s1582_s1, %s751_s17  ;;  %s1528_s27 = int_to_ptr.vmem [resolvable:$true] %s663_s27 }
  0x37   : > { %395 = vst [vmem:[%s1021_s25 + $0x10] sm:$0xff] %v139_v2  ;;  %v141_v4 = vld [vmem:[%s1012_s30 + $0x20] sm:$0xff]  ;;  %v142_v5 = vld [vmem:[%s1012_s30 + $0x28] sm:$0xff]  ;;  %396 = vst [vmem:[%s1021_s25 + $0x18] sm:$0xff] %v140_v3  ;;  %s650_s2 = scalar_lea.sflag [#allocation4], %s1008_s23  ;;  %s830_s3 = scalar_lea.vmem %s1528_s27, 32768 }
  0x38   : > { %397 = vst [vmem:[%s1021_s25 + $0x20] sm:$0xff] %v141_v4  ;;  %398 = vst [vmem:[%s1021_s25 + $0x28] sm:$0xff] %v142_v5  ;;  %v143_v6 = vld [vmem:[%s1012_s30 + $0x30] sm:$0xff]  ;;  %v144_v7 = vld [vmem:[%s1012_s30 + $0x38] sm:$0xff]  ;;  %p831_p10 = scmp.ne.s32.totalorder %s1528_s27, %s830_s3  ;;  %p1591_p11 = scmp.ne.s32.totalorder %s1587_s18, 0 }
  0x39   : > { %v145_v8 = vld [vmem:[%s1012_s30 + $0x40] sm:$0xff]  ;;  %399 = vst [vmem:[%s1021_s25 + $0x30] sm:$0xff] %v143_v6  ;;  %400 = vst [vmem:[%s1021_s25 + $0x38] sm:$0xff] %v144_v7  ;;  %v146_v9 = vld [vmem:[%s1012_s30 + $0x48] sm:$0xff]  ;;  %s899_s4 = smov [#allocation5]  }
  0x3a   : > { %401 = vst [vmem:[%s1021_s25 + $0x40] sm:$0xff] %v145_v8  ;;  %v147_v10 = vld [vmem:[%s1012_s30 + $0x50] sm:$0xff]  ;;  %v148_v11 = vld [vmem:[%s1012_s30 + $0x58] sm:$0xff]  ;;  %402 = vst [vmem:[%s1021_s25 + $0x48] sm:$0xff] %v146_v9  ;;  %p832_p12 = pnand %p831_p10, %p1591_p11  ;;  %s834_s5 = sshll.u32 %s899_s4, 4  ;;  %s835_s5 = int_to_ptr.vmem [resolvable:$false] %s834_s5 }
  0x3b   : > { %403 = vst [vmem:[%s1021_s25 + $0x50] sm:$0xff] %v147_v10  ;;  %404 = vst [vmem:[%s1021_s25 + $0x58] sm:$0xff] %v148_v11  ;;  %v149_v12 = vld [vmem:[%s1012_s30 + $0x60] sm:$0xff]  ;;  %v150_v13 = vld [vmem:[%s1012_s30 + $0x68] sm:$0xff]  ;;  %s836_s11 = scalar_lea.vmem %s835_s5, 65536  ;;  %p837_p5 = scmp.lt.s32.totalorder %s1528_s27, %s835_s5 }
  0x3c   : > { %v151_v14 = vld [vmem:[%s1012_s30 + $0x70] sm:$0xff]  ;;  %405 = vst [vmem:[%s1021_s25 + $0x60] sm:$0xff] %v149_v12  ;;  %406 = vst [vmem:[%s1021_s25 + $0x68] sm:$0xff] %v150_v13  ;;  %v152_v15 = vld [vmem:[%s1012_s30 + $0x78] sm:$0xff]  ;;  %p833_p4 = pneg %p832_p12  ;;  %p838_p7 = scmp.lt.s32.totalorder %s836_s11, %s830_s3 }
  0x3d   : > { %407 = vst [vmem:[%s1021_s25 + $0x70] sm:$0xff] %v151_v14  ;;  %v153_v16 = vld [vmem:[%s1012_s30 + $0x80] sm:$0xff]  ;;  %v154_v17 = vld [vmem:[%s1012_s30 + $0x88] sm:$0xff]  ;;  %408 = vst [vmem:[%s1021_s25 + $0x78] sm:$0xff] %v152_v15 }
  0x3e   : > { %409 = vst [vmem:[%s1021_s25 + $0x80] sm:$0xff] %v153_v16  ;;  %410 = vst [vmem:[%s1021_s25 + $0x88] sm:$0xff] %v154_v17  ;;  %v155_v18 = vld [vmem:[%s1012_s30 + $0x90] sm:$0xff]  ;;  %v156_v19 = vld [vmem:[%s1012_s30 + $0x98] sm:$0xff]  ;;  %p839_p8 = por %p838_p7, %p837_p5 }
  0x3f   : > { %v157_v20 = vld [vmem:[%s1012_s30 + $0xa0] sm:$0xff]  ;;  %411 = vst [vmem:[%s1021_s25 + $0x90] sm:$0xff] %v155_v18  ;;  %412 = vst [vmem:[%s1021_s25 + $0x98] sm:$0xff] %v156_v19  ;;  %v158_v21 = vld [vmem:[%s1012_s30 + $0xa8] sm:$0xff] }
  0x40   : > { %413 = vst [vmem:[%s1021_s25 + $0xa0] sm:$0xff] %v157_v20  ;;  %v159_v22 = vld [vmem:[%s1012_s30 + $0xb0] sm:$0xff]  ;;  %v160_v23 = vld [vmem:[%s1012_s30 + $0xb8] sm:$0xff]  ;;  %414 = vst [vmem:[%s1021_s25 + $0xa8] sm:$0xff] %v158_v21  ;;  %p840_p9 = pnand %p839_p8, %p833_p4 }
  0x41   : > { %415 = vst [vmem:[%s1021_s25 + $0xb0] sm:$0xff] %v159_v22  ;;  %416 = vst [vmem:[%s1021_s25 + $0xb8] sm:$0xff] %v160_v23  ;;  %v161_v24 = vld [vmem:[%s1012_s30 + $0xc0] sm:$0xff]  ;;  %v162_v25 = vld [vmem:[%s1012_s30 + $0xc8] sm:$0xff] }
  0x42   : > { %v163_v26 = vld [vmem:[%s1012_s30 + $0xd0] sm:$0xff]  ;;  %417 = vst [vmem:[%s1021_s25 + $0xc0] sm:$0xff] %v161_v24  ;;  %418 = vst [vmem:[%s1021_s25 + $0xc8] sm:$0xff] %v162_v25  ;;  %v164_v27 = vld [vmem:[%s1012_s30 + $0xd8] sm:$0xff] }
  0x43   : > { %419 = vst [vmem:[%s1021_s25 + $0xd0] sm:$0xff] %v163_v26  ;;  %v165_v28 = vld [vmem:[%s1012_s30 + $0xe0] sm:$0xff]  ;;  %v166_v29 = vld [vmem:[%s1012_s30 + $0xe8] sm:$0xff]  ;;  %420 = vst [vmem:[%s1021_s25 + $0xd8] sm:$0xff] %v164_v27 }
  0x44   : > { %421 = vst [vmem:[%s1021_s25 + $0xe0] sm:$0xff] %v165_v28  ;;  %422 = vst [vmem:[%s1021_s25 + $0xe8] sm:$0xff] %v166_v29  ;;  %v167_v30 = vld [vmem:[%s1012_s30 + $0xf0] sm:$0xff]  ;;  %v168_v31 = vld [vmem:[%s1012_s30 + $0xf8] sm:$0xff] }
  0x45   : > { %v169_v32 = vld [vmem:[%s1012_s30 + $0x100] sm:$0xff]  ;;  %423 = vst [vmem:[%s1021_s25 + $0xf0] sm:$0xff] %v167_v30  ;;  %424 = vst [vmem:[%s1021_s25 + $0xf8] sm:$0xff] %v168_v31  ;;  %v170_v33 = vld [vmem:[%s1012_s30 + $0x108] sm:$0xff] }
  0x46   : > { %425 = vst [vmem:[%s1021_s25 + $0x100] sm:$0xff] %v169_v32  ;;  %v171_v34 = vld [vmem:[%s1012_s30 + $0x110] sm:$0xff]  ;;  %v172_v35 = vld [vmem:[%s1012_s30 + $0x118] sm:$0xff]  ;;  %426 = vst [vmem:[%s1021_s25 + $0x108] sm:$0xff] %v170_v33 }
  0x47   : > { %427 = vst [vmem:[%s1021_s25 + $0x110] sm:$0xff] %v171_v34  ;;  %428 = vst [vmem:[%s1021_s25 + $0x118] sm:$0xff] %v172_v35  ;;  %v173_v36 = vld [vmem:[%s1012_s30 + $0x120] sm:$0xff]  ;;  %v174_v37 = vld [vmem:[%s1012_s30 + $0x128] sm:$0xff] }
  0x48   : > { %v175_v38 = vld [vmem:[%s1012_s30 + $0x130] sm:$0xff]  ;;  %429 = vst [vmem:[%s1021_s25 + $0x120] sm:$0xff] %v173_v36  ;;  %430 = vst [vmem:[%s1021_s25 + $0x128] sm:$0xff] %v174_v37  ;;  %v176_v39 = vld [vmem:[%s1012_s30 + $0x138] sm:$0xff] }
  0x49   : > { %431 = vst [vmem:[%s1021_s25 + $0x130] sm:$0xff] %v175_v38  ;;  %v177_v40 = vld [vmem:[%s1012_s30 + $0x140] sm:$0xff]  ;;  %v178_v41 = vld [vmem:[%s1012_s30 + $0x148] sm:$0xff]  ;;  %432 = vst [vmem:[%s1021_s25 + $0x138] sm:$0xff] %v176_v39 }
  0x4a   : > { %433 = vst [vmem:[%s1021_s25 + $0x140] sm:$0xff] %v177_v40  ;;  %434 = vst [vmem:[%s1021_s25 + $0x148] sm:$0xff] %v178_v41  ;;  %v179_v42 = vld [vmem:[%s1012_s30 + $0x150] sm:$0xff]  ;;  %v180_v43 = vld [vmem:[%s1012_s30 + $0x158] sm:$0xff] }
  0x4b   : > { %v181_v44 = vld [vmem:[%s1012_s30 + $0x160] sm:$0xff]  ;;  %435 = vst [vmem:[%s1021_s25 + $0x150] sm:$0xff] %v179_v42  ;;  %436 = vst [vmem:[%s1021_s25 + $0x158] sm:$0xff] %v180_v43  ;;  %v182_v45 = vld [vmem:[%s1012_s30 + $0x168] sm:$0xff] }
  0x4c   : > { %437 = vst [vmem:[%s1021_s25 + $0x160] sm:$0xff] %v181_v44  ;;  %v183_v46 = vld [vmem:[%s1012_s30 + $0x170] sm:$0xff]  ;;  %v184_v47 = vld [vmem:[%s1012_s30 + $0x178] sm:$0xff]  ;;  %438 = vst [vmem:[%s1021_s25 + $0x168] sm:$0xff] %v182_v45 }
  0x4d   : > { %439 = vst [vmem:[%s1021_s25 + $0x170] sm:$0xff] %v183_v46  ;;  %440 = vst [vmem:[%s1021_s25 + $0x178] sm:$0xff] %v184_v47  ;;  %v185_v48 = vld [vmem:[%s1012_s30 + $0x180] sm:$0xff]  ;;  %v186_v49 = vld [vmem:[%s1012_s30 + $0x188] sm:$0xff] }
  0x4e   : > { %v187_v50 = vld [vmem:[%s1012_s30 + $0x190] sm:$0xff]  ;;  %441 = vst [vmem:[%s1021_s25 + $0x180] sm:$0xff] %v185_v48  ;;  %442 = vst [vmem:[%s1021_s25 + $0x188] sm:$0xff] %v186_v49  ;;  %v188_v51 = vld [vmem:[%s1012_s30 + $0x198] sm:$0xff] }
  0x4f   : > { %443 = vst [vmem:[%s1021_s25 + $0x190] sm:$0xff] %v187_v50  ;;  %v189_v52 = vld [vmem:[%s1012_s30 + $0x1a0] sm:$0xff]  ;;  %v190_v53 = vld [vmem:[%s1012_s30 + $0x1a8] sm:$0xff]  ;;  %444 = vst [vmem:[%s1021_s25 + $0x198] sm:$0xff] %v188_v51 }
  0x50   : > { %445 = vst [vmem:[%s1021_s25 + $0x1a0] sm:$0xff] %v189_v52  ;;  %446 = vst [vmem:[%s1021_s25 + $0x1a8] sm:$0xff] %v190_v53  ;;  %v191_v54 = vld [vmem:[%s1012_s30 + $0x1b0] sm:$0xff]  ;;  %v192_v55 = vld [vmem:[%s1012_s30 + $0x1b8] sm:$0xff] }
  0x51   : > { %v193_v56 = vld [vmem:[%s1012_s30 + $0x1c0] sm:$0xff]  ;;  %447 = vst [vmem:[%s1021_s25 + $0x1b0] sm:$0xff] %v191_v54  ;;  %448 = vst [vmem:[%s1021_s25 + $0x1b8] sm:$0xff] %v192_v55  ;;  %v194_v57 = vld [vmem:[%s1012_s30 + $0x1c8] sm:$0xff] }
  0x52   : > { %449 = vst [vmem:[%s1021_s25 + $0x1c0] sm:$0xff] %v193_v56  ;;  %v195_v58 = vld [vmem:[%s1012_s30 + $0x1d0] sm:$0xff]  ;;  %v196_v59 = vld [vmem:[%s1012_s30 + $0x1d8] sm:$0xff]  ;;  %450 = vst [vmem:[%s1021_s25 + $0x1c8] sm:$0xff] %v194_v57 }
  0x53   : > { %451 = vst [vmem:[%s1021_s25 + $0x1d0] sm:$0xff] %v195_v58  ;;  %452 = vst [vmem:[%s1021_s25 + $0x1d8] sm:$0xff] %v196_v59  ;;  %v197_v60 = vld [vmem:[%s1012_s30 + $0x1e0] sm:$0xff]  ;;  %v198_v61 = vld [vmem:[%s1012_s30 + $0x1e8] sm:$0xff] }
  0x54   : > { %v199_v62 = vld [vmem:[%s1012_s30 + $0x1f0] sm:$0xff]  ;;  %453 = vst [vmem:[%s1021_s25 + $0x1e0] sm:$0xff] %v197_v60  ;;  %454 = vst [vmem:[%s1021_s25 + $0x1e8] sm:$0xff] %v198_v61  ;;  %v200_v63 = vld [vmem:[%s1012_s30 + $0x1f8] sm:$0xff] }
  0x55   : > { %455 = vst [vmem:[%s1021_s25 + $0x1f0] sm:$0xff] %v199_v62  ;;  %v201_v0 = vld [vmem:[%s1012_s30 + $0x200] sm:$0xff]  ;;  %v202_v1 = vld [vmem:[%s1012_s30 + $0x208] sm:$0xff]  ;;  %456 = vst [vmem:[%s1021_s25 + $0x1f8] sm:$0xff] %v200_v63 }
  0x56   : > { %457 = vst [vmem:[%s1021_s25 + $0x200] sm:$0xff] %v201_v0  ;;  %458 = vst [vmem:[%s1021_s25 + $0x208] sm:$0xff] %v202_v1  ;;  %v203_v2 = vld [vmem:[%s1012_s30 + $0x210] sm:$0xff]  ;;  %v204_v3 = vld [vmem:[%s1012_s30 + $0x218] sm:$0xff] }
  0x57   : > { %v205_v4 = vld [vmem:[%s1012_s30 + $0x220] sm:$0xff]  ;;  %459 = vst [vmem:[%s1021_s25 + $0x210] sm:$0xff] %v203_v2  ;;  %460 = vst [vmem:[%s1021_s25 + $0x218] sm:$0xff] %v204_v3  ;;  %v206_v5 = vld [vmem:[%s1012_s30 + $0x228] sm:$0xff] }
  0x58   : > { %461 = vst [vmem:[%s1021_s25 + $0x220] sm:$0xff] %v205_v4  ;;  %v207_v6 = vld [vmem:[%s1012_s30 + $0x230] sm:$0xff]  ;;  %v208_v7 = vld [vmem:[%s1012_s30 + $0x238] sm:$0xff]  ;;  %462 = vst [vmem:[%s1021_s25 + $0x228] sm:$0xff] %v206_v5 }
  0x59   : > { %463 = vst [vmem:[%s1021_s25 + $0x230] sm:$0xff] %v207_v6  ;;  %464 = vst [vmem:[%s1021_s25 + $0x238] sm:$0xff] %v208_v7  ;;  %v209_v8 = vld [vmem:[%s1012_s30 + $0x240] sm:$0xff]  ;;  %v210_v9 = vld [vmem:[%s1012_s30 + $0x248] sm:$0xff] }
  0x5a   : > { %v211_v10 = vld [vmem:[%s1012_s30 + $0x250] sm:$0xff]  ;;  %465 = vst [vmem:[%s1021_s25 + $0x240] sm:$0xff] %v209_v8  ;;  %466 = vst [vmem:[%s1021_s25 + $0x248] sm:$0xff] %v210_v9  ;;  %v212_v11 = vld [vmem:[%s1012_s30 + $0x258] sm:$0xff] }
  0x5b   : > { %467 = vst [vmem:[%s1021_s25 + $0x250] sm:$0xff] %v211_v10  ;;  %v213_v12 = vld [vmem:[%s1012_s30 + $0x260] sm:$0xff]  ;;  %v214_v13 = vld [vmem:[%s1012_s30 + $0x268] sm:$0xff]  ;;  %468 = vst [vmem:[%s1021_s25 + $0x258] sm:$0xff] %v212_v11 }
  0x5c   : > { %469 = vst [vmem:[%s1021_s25 + $0x260] sm:$0xff] %v213_v12  ;;  %470 = vst [vmem:[%s1021_s25 + $0x268] sm:$0xff] %v214_v13  ;;  %v215_v14 = vld [vmem:[%s1012_s30 + $0x270] sm:$0xff]  ;;  %v216_v15 = vld [vmem:[%s1012_s30 + $0x278] sm:$0xff] }
  0x5d   : > { %v217_v16 = vld [vmem:[%s1012_s30 + $0x280] sm:$0xff]  ;;  %471 = vst [vmem:[%s1021_s25 + $0x270] sm:$0xff] %v215_v14  ;;  %472 = vst [vmem:[%s1021_s25 + $0x278] sm:$0xff] %v216_v15  ;;  %v218_v17 = vld [vmem:[%s1012_s30 + $0x288] sm:$0xff] }
  0x5e   : > { %473 = vst [vmem:[%s1021_s25 + $0x280] sm:$0xff] %v217_v16  ;;  %v219_v18 = vld [vmem:[%s1012_s30 + $0x290] sm:$0xff]  ;;  %v220_v19 = vld [vmem:[%s1012_s30 + $0x298] sm:$0xff]  ;;  %474 = vst [vmem:[%s1021_s25 + $0x288] sm:$0xff] %v218_v17 }
  0x5f   : > { %475 = vst [vmem:[%s1021_s25 + $0x290] sm:$0xff] %v219_v18  ;;  %476 = vst [vmem:[%s1021_s25 + $0x298] sm:$0xff] %v220_v19  ;;  %v221_v20 = vld [vmem:[%s1012_s30 + $0x2a0] sm:$0xff]  ;;  %v222_v21 = vld [vmem:[%s1012_s30 + $0x2a8] sm:$0xff] }
  0x60   : > { %v223_v22 = vld [vmem:[%s1012_s30 + $0x2b0] sm:$0xff]  ;;  %477 = vst [vmem:[%s1021_s25 + $0x2a0] sm:$0xff] %v221_v20  ;;  %478 = vst [vmem:[%s1021_s25 + $0x2a8] sm:$0xff] %v222_v21  ;;  %v224_v23 = vld [vmem:[%s1012_s30 + $0x2b8] sm:$0xff] }
  0x61   : > { %479 = vst [vmem:[%s1021_s25 + $0x2b0] sm:$0xff] %v223_v22  ;;  %v225_v24 = vld [vmem:[%s1012_s30 + $0x2c0] sm:$0xff]  ;;  %v226_v25 = vld [vmem:[%s1012_s30 + $0x2c8] sm:$0xff]  ;;  %480 = vst [vmem:[%s1021_s25 + $0x2b8] sm:$0xff] %v224_v23 }
  0x62   : > { %481 = vst [vmem:[%s1021_s25 + $0x2c0] sm:$0xff] %v225_v24  ;;  %482 = vst [vmem:[%s1021_s25 + $0x2c8] sm:$0xff] %v226_v25  ;;  %v227_v26 = vld [vmem:[%s1012_s30 + $0x2d0] sm:$0xff]  ;;  %v228_v27 = vld [vmem:[%s1012_s30 + $0x2d8] sm:$0xff] }
  0x63   : > { %v229_v28 = vld [vmem:[%s1012_s30 + $0x2e0] sm:$0xff]  ;;  %483 = vst [vmem:[%s1021_s25 + $0x2d0] sm:$0xff] %v227_v26  ;;  %484 = vst [vmem:[%s1021_s25 + $0x2d8] sm:$0xff] %v228_v27  ;;  %v230_v29 = vld [vmem:[%s1012_s30 + $0x2e8] sm:$0xff] }
  0x64   : > { %485 = vst [vmem:[%s1021_s25 + $0x2e0] sm:$0xff] %v229_v28  ;;  %v231_v30 = vld [vmem:[%s1012_s30 + $0x2f0] sm:$0xff]  ;;  %v232_v31 = vld [vmem:[%s1012_s30 + $0x2f8] sm:$0xff]  ;;  %486 = vst [vmem:[%s1021_s25 + $0x2e8] sm:$0xff] %v230_v29 }
  0x65   : > { %487 = vst [vmem:[%s1021_s25 + $0x2f0] sm:$0xff] %v231_v30  ;;  %488 = vst [vmem:[%s1021_s25 + $0x2f8] sm:$0xff] %v232_v31  ;;  %v233_v32 = vld [vmem:[%s1012_s30 + $0x300] sm:$0xff]  ;;  %v234_v33 = vld [vmem:[%s1012_s30 + $0x308] sm:$0xff] }
  0x66   : > { %v235_v34 = vld [vmem:[%s1012_s30 + $0x310] sm:$0xff]  ;;  %489 = vst [vmem:[%s1021_s25 + $0x300] sm:$0xff] %v233_v32  ;;  %490 = vst [vmem:[%s1021_s25 + $0x308] sm:$0xff] %v234_v33  ;;  %v236_v35 = vld [vmem:[%s1012_s30 + $0x318] sm:$0xff] }
  0x67   : > { %491 = vst [vmem:[%s1021_s25 + $0x310] sm:$0xff] %v235_v34  ;;  %v237_v36 = vld [vmem:[%s1012_s30 + $0x320] sm:$0xff]  ;;  %v238_v37 = vld [vmem:[%s1012_s30 + $0x328] sm:$0xff]  ;;  %492 = vst [vmem:[%s1021_s25 + $0x318] sm:$0xff] %v236_v35 }
  0x68   : > { %493 = vst [vmem:[%s1021_s25 + $0x320] sm:$0xff] %v237_v36  ;;  %494 = vst [vmem:[%s1021_s25 + $0x328] sm:$0xff] %v238_v37  ;;  %v239_v38 = vld [vmem:[%s1012_s30 + $0x330] sm:$0xff]  ;;  %v240_v39 = vld [vmem:[%s1012_s30 + $0x338] sm:$0xff] }
  0x69   : > { %v241_v40 = vld [vmem:[%s1012_s30 + $0x340] sm:$0xff]  ;;  %495 = vst [vmem:[%s1021_s25 + $0x330] sm:$0xff] %v239_v38  ;;  %496 = vst [vmem:[%s1021_s25 + $0x338] sm:$0xff] %v240_v39  ;;  %v242_v41 = vld [vmem:[%s1012_s30 + $0x348] sm:$0xff] }
  0x6a   : > { %497 = vst [vmem:[%s1021_s25 + $0x340] sm:$0xff] %v241_v40  ;;  %v243_v42 = vld [vmem:[%s1012_s30 + $0x350] sm:$0xff]  ;;  %v244_v43 = vld [vmem:[%s1012_s30 + $0x358] sm:$0xff]  ;;  %498 = vst [vmem:[%s1021_s25 + $0x348] sm:$0xff] %v242_v41 }
  0x6b   : > { %499 = vst [vmem:[%s1021_s25 + $0x350] sm:$0xff] %v243_v42  ;;  %500 = vst [vmem:[%s1021_s25 + $0x358] sm:$0xff] %v244_v43  ;;  %v245_v44 = vld [vmem:[%s1012_s30 + $0x360] sm:$0xff]  ;;  %v246_v45 = vld [vmem:[%s1012_s30 + $0x368] sm:$0xff] }
  0x6c   : > { %v247_v46 = vld [vmem:[%s1012_s30 + $0x370] sm:$0xff]  ;;  %501 = vst [vmem:[%s1021_s25 + $0x360] sm:$0xff] %v245_v44  ;;  %502 = vst [vmem:[%s1021_s25 + $0x368] sm:$0xff] %v246_v45  ;;  %v248_v47 = vld [vmem:[%s1012_s30 + $0x378] sm:$0xff] }
  0x6d   : > { %503 = vst [vmem:[%s1021_s25 + $0x370] sm:$0xff] %v247_v46  ;;  %v249_v48 = vld [vmem:[%s1012_s30 + $0x380] sm:$0xff]  ;;  %v250_v49 = vld [vmem:[%s1012_s30 + $0x388] sm:$0xff]  ;;  %504 = vst [vmem:[%s1021_s25 + $0x378] sm:$0xff] %v248_v47 }
  0x6e   : > { %505 = vst [vmem:[%s1021_s25 + $0x380] sm:$0xff] %v249_v48  ;;  %506 = vst [vmem:[%s1021_s25 + $0x388] sm:$0xff] %v250_v49  ;;  %v251_v50 = vld [vmem:[%s1012_s30 + $0x390] sm:$0xff]  ;;  %v252_v51 = vld [vmem:[%s1012_s30 + $0x398] sm:$0xff] }
  0x6f   : > { %v253_v52 = vld [vmem:[%s1012_s30 + $0x3a0] sm:$0xff]  ;;  %507 = vst [vmem:[%s1021_s25 + $0x390] sm:$0xff] %v251_v50  ;;  %508 = vst [vmem:[%s1021_s25 + $0x398] sm:$0xff] %v252_v51  ;;  %v254_v53 = vld [vmem:[%s1012_s30 + $0x3a8] sm:$0xff] }
  0x70   : > { %509 = vst [vmem:[%s1021_s25 + $0x3a0] sm:$0xff] %v253_v52  ;;  %v255_v54 = vld [vmem:[%s1012_s30 + $0x3b0] sm:$0xff]  ;;  %v256_v55 = vld [vmem:[%s1012_s30 + $0x3b8] sm:$0xff]  ;;  %510 = vst [vmem:[%s1021_s25 + $0x3a8] sm:$0xff] %v254_v53 }
  0x71   : > { %511 = vst [vmem:[%s1021_s25 + $0x3b0] sm:$0xff] %v255_v54  ;;  %512 = vst [vmem:[%s1021_s25 + $0x3b8] sm:$0xff] %v256_v55  ;;  %v257_v56 = vld [vmem:[%s1012_s30 + $0x3c0] sm:$0xff]  ;;  %v258_v57 = vld [vmem:[%s1012_s30 + $0x3c8] sm:$0xff] }
  0x72   : > { %v259_v58 = vld [vmem:[%s1012_s30 + $0x3d0] sm:$0xff]  ;;  %513 = vst [vmem:[%s1021_s25 + $0x3c0] sm:$0xff] %v257_v56  ;;  %514 = vst [vmem:[%s1021_s25 + $0x3c8] sm:$0xff] %v258_v57  ;;  %v260_v59 = vld [vmem:[%s1012_s30 + $0x3d8] sm:$0xff] }
  0x73   : > { %515 = vst [vmem:[%s1021_s25 + $0x3d0] sm:$0xff] %v259_v58  ;;  %v261_v60 = vld [vmem:[%s1012_s30 + $0x3e0] sm:$0xff]  ;;  %v262_v61 = vld [vmem:[%s1012_s30 + $0x3e8] sm:$0xff]  ;;  %516 = vst [vmem:[%s1021_s25 + $0x3d8] sm:$0xff] %v260_v59 }
  0x74   : > { %517 = vst [vmem:[%s1021_s25 + $0x3e0] sm:$0xff] %v261_v60  ;;  %518 = vst [vmem:[%s1021_s25 + $0x3e8] sm:$0xff] %v262_v61  ;;  %v263_v62 = vld [vmem:[%s1012_s30 + $0x3f0] sm:$0xff]  ;;  %v264_v63 = vld [vmem:[%s1012_s30 + $0x3f8] sm:$0xff] }
  0x75   : > { %v265_v0 = vld [vmem:[%s1012_s30 + $0x400] sm:$0xff]  ;;  %519 = vst [vmem:[%s1021_s25 + $0x3f0] sm:$0xff] %v263_v62  ;;  %520 = vst [vmem:[%s1021_s25 + $0x3f8] sm:$0xff] %v264_v63  ;;  %v266_v1 = vld [vmem:[%s1012_s30 + $0x408] sm:$0xff] }
  0x76   : > { %521 = vst [vmem:[%s1021_s25 + $0x400] sm:$0xff] %v265_v0  ;;  %v267_v2 = vld [vmem:[%s1012_s30 + $0x410] sm:$0xff]  ;;  %v268_v3 = vld [vmem:[%s1012_s30 + $0x418] sm:$0xff]  ;;  %522 = vst [vmem:[%s1021_s25 + $0x408] sm:$0xff] %v266_v1 }
  0x77   : > { %523 = vst [vmem:[%s1021_s25 + $0x410] sm:$0xff] %v267_v2  ;;  %524 = vst [vmem:[%s1021_s25 + $0x418] sm:$0xff] %v268_v3  ;;  %v269_v4 = vld [vmem:[%s1012_s30 + $0x420] sm:$0xff]  ;;  %v270_v5 = vld [vmem:[%s1012_s30 + $0x428] sm:$0xff] }
  0x78   : > { %v271_v6 = vld [vmem:[%s1012_s30 + $0x430] sm:$0xff]  ;;  %525 = vst [vmem:[%s1021_s25 + $0x420] sm:$0xff] %v269_v4  ;;  %526 = vst [vmem:[%s1021_s25 + $0x428] sm:$0xff] %v270_v5  ;;  %v272_v7 = vld [vmem:[%s1012_s30 + $0x438] sm:$0xff] }
  0x79   : > { %527 = vst [vmem:[%s1021_s25 + $0x430] sm:$0xff] %v271_v6  ;;  %v273_v8 = vld [vmem:[%s1012_s30 + $0x440] sm:$0xff]  ;;  %v274_v9 = vld [vmem:[%s1012_s30 + $0x448] sm:$0xff]  ;;  %528 = vst [vmem:[%s1021_s25 + $0x438] sm:$0xff] %v272_v7 }
  0x7a   : > { %529 = vst [vmem:[%s1021_s25 + $0x440] sm:$0xff] %v273_v8  ;;  %530 = vst [vmem:[%s1021_s25 + $0x448] sm:$0xff] %v274_v9  ;;  %v275_v10 = vld [vmem:[%s1012_s30 + $0x450] sm:$0xff]  ;;  %v276_v11 = vld [vmem:[%s1012_s30 + $0x458] sm:$0xff] }
  0x7b   : > { %v277_v12 = vld [vmem:[%s1012_s30 + $0x460] sm:$0xff]  ;;  %531 = vst [vmem:[%s1021_s25 + $0x450] sm:$0xff] %v275_v10  ;;  %532 = vst [vmem:[%s1021_s25 + $0x458] sm:$0xff] %v276_v11  ;;  %v278_v13 = vld [vmem:[%s1012_s30 + $0x468] sm:$0xff] }
  0x7c   : > { %533 = vst [vmem:[%s1021_s25 + $0x460] sm:$0xff] %v277_v12  ;;  %v279_v14 = vld [vmem:[%s1012_s30 + $0x470] sm:$0xff]  ;;  %v280_v15 = vld [vmem:[%s1012_s30 + $0x478] sm:$0xff]  ;;  %534 = vst [vmem:[%s1021_s25 + $0x468] sm:$0xff] %v278_v13 }
  0x7d   : > { %535 = vst [vmem:[%s1021_s25 + $0x470] sm:$0xff] %v279_v14  ;;  %536 = vst [vmem:[%s1021_s25 + $0x478] sm:$0xff] %v280_v15  ;;  %v281_v16 = vld [vmem:[%s1012_s30 + $0x480] sm:$0xff]  ;;  %v282_v17 = vld [vmem:[%s1012_s30 + $0x488] sm:$0xff] }
  0x7e   : > { %v283_v18 = vld [vmem:[%s1012_s30 + $0x490] sm:$0xff]  ;;  %537 = vst [vmem:[%s1021_s25 + $0x480] sm:$0xff] %v281_v16  ;;  %538 = vst [vmem:[%s1021_s25 + $0x488] sm:$0xff] %v282_v17  ;;  %v284_v19 = vld [vmem:[%s1012_s30 + $0x498] sm:$0xff] }
  0x7f   : > { %539 = vst [vmem:[%s1021_s25 + $0x490] sm:$0xff] %v283_v18  ;;  %v285_v20 = vld [vmem:[%s1012_s30 + $0x4a0] sm:$0xff]  ;;  %v286_v21 = vld [vmem:[%s1012_s30 + $0x4a8] sm:$0xff]  ;;  %540 = vst [vmem:[%s1021_s25 + $0x498] sm:$0xff] %v284_v19 }
  0x80   : > { %541 = vst [vmem:[%s1021_s25 + $0x4a0] sm:$0xff] %v285_v20  ;;  %542 = vst [vmem:[%s1021_s25 + $0x4a8] sm:$0xff] %v286_v21  ;;  %v287_v22 = vld [vmem:[%s1012_s30 + $0x4b0] sm:$0xff]  ;;  %v288_v23 = vld [vmem:[%s1012_s30 + $0x4b8] sm:$0xff] }
  0x81   : > { %v289_v24 = vld [vmem:[%s1012_s30 + $0x4c0] sm:$0xff]  ;;  %543 = vst [vmem:[%s1021_s25 + $0x4b0] sm:$0xff] %v287_v22  ;;  %544 = vst [vmem:[%s1021_s25 + $0x4b8] sm:$0xff] %v288_v23  ;;  %v290_v25 = vld [vmem:[%s1012_s30 + $0x4c8] sm:$0xff] }
  0x82   : > { %545 = vst [vmem:[%s1021_s25 + $0x4c0] sm:$0xff] %v289_v24  ;;  %v291_v26 = vld [vmem:[%s1012_s30 + $0x4d0] sm:$0xff]  ;;  %v292_v27 = vld [vmem:[%s1012_s30 + $0x4d8] sm:$0xff]  ;;  %546 = vst [vmem:[%s1021_s25 + $0x4c8] sm:$0xff] %v290_v25 }
  0x83   : > { %547 = vst [vmem:[%s1021_s25 + $0x4d0] sm:$0xff] %v291_v26  ;;  %548 = vst [vmem:[%s1021_s25 + $0x4d8] sm:$0xff] %v292_v27  ;;  %v293_v28 = vld [vmem:[%s1012_s30 + $0x4e0] sm:$0xff]  ;;  %v294_v29 = vld [vmem:[%s1012_s30 + $0x4e8] sm:$0xff] }
  0x84   : > { %v295_v30 = vld [vmem:[%s1012_s30 + $0x4f0] sm:$0xff]  ;;  %549 = vst [vmem:[%s1021_s25 + $0x4e0] sm:$0xff] %v293_v28  ;;  %550 = vst [vmem:[%s1021_s25 + $0x4e8] sm:$0xff] %v294_v29  ;;  %v296_v31 = vld [vmem:[%s1012_s30 + $0x4f8] sm:$0xff] }
  0x85   : > { %551 = vst [vmem:[%s1021_s25 + $0x4f0] sm:$0xff] %v295_v30  ;;  %v297_v32 = vld [vmem:[%s1012_s30 + $0x500] sm:$0xff]  ;;  %v298_v33 = vld [vmem:[%s1012_s30 + $0x508] sm:$0xff]  ;;  %552 = vst [vmem:[%s1021_s25 + $0x4f8] sm:$0xff] %v296_v31 }
  0x86   : > { %553 = vst [vmem:[%s1021_s25 + $0x500] sm:$0xff] %v297_v32  ;;  %554 = vst [vmem:[%s1021_s25 + $0x508] sm:$0xff] %v298_v33  ;;  %v299_v34 = vld [vmem:[%s1012_s30 + $0x510] sm:$0xff]  ;;  %v300_v35 = vld [vmem:[%s1012_s30 + $0x518] sm:$0xff] }
  0x87   : > { %v301_v36 = vld [vmem:[%s1012_s30 + $0x520] sm:$0xff]  ;;  %555 = vst [vmem:[%s1021_s25 + $0x510] sm:$0xff] %v299_v34  ;;  %556 = vst [vmem:[%s1021_s25 + $0x518] sm:$0xff] %v300_v35  ;;  %v302_v37 = vld [vmem:[%s1012_s30 + $0x528] sm:$0xff] }
  0x88   : > { %557 = vst [vmem:[%s1021_s25 + $0x520] sm:$0xff] %v301_v36  ;;  %v303_v38 = vld [vmem:[%s1012_s30 + $0x530] sm:$0xff]  ;;  %v304_v39 = vld [vmem:[%s1012_s30 + $0x538] sm:$0xff]  ;;  %558 = vst [vmem:[%s1021_s25 + $0x528] sm:$0xff] %v302_v37 }
  0x89   : > { %559 = vst [vmem:[%s1021_s25 + $0x530] sm:$0xff] %v303_v38  ;;  %560 = vst [vmem:[%s1021_s25 + $0x538] sm:$0xff] %v304_v39  ;;  %v305_v40 = vld [vmem:[%s1012_s30 + $0x540] sm:$0xff]  ;;  %v306_v41 = vld [vmem:[%s1012_s30 + $0x548] sm:$0xff] }
  0x8a   : > { %v307_v42 = vld [vmem:[%s1012_s30 + $0x550] sm:$0xff]  ;;  %561 = vst [vmem:[%s1021_s25 + $0x540] sm:$0xff] %v305_v40  ;;  %562 = vst [vmem:[%s1021_s25 + $0x548] sm:$0xff] %v306_v41  ;;  %v308_v43 = vld [vmem:[%s1012_s30 + $0x558] sm:$0xff] }
  0x8b   : > { %563 = vst [vmem:[%s1021_s25 + $0x550] sm:$0xff] %v307_v42  ;;  %v309_v44 = vld [vmem:[%s1012_s30 + $0x560] sm:$0xff]  ;;  %v310_v45 = vld [vmem:[%s1012_s30 + $0x568] sm:$0xff]  ;;  %564 = vst [vmem:[%s1021_s25 + $0x558] sm:$0xff] %v308_v43 }
  0x8c   : > { %565 = vst [vmem:[%s1021_s25 + $0x560] sm:$0xff] %v309_v44  ;;  %566 = vst [vmem:[%s1021_s25 + $0x568] sm:$0xff] %v310_v45  ;;  %v311_v46 = vld [vmem:[%s1012_s30 + $0x570] sm:$0xff]  ;;  %v312_v47 = vld [vmem:[%s1012_s30 + $0x578] sm:$0xff] }
  0x8d   : > { %v313_v48 = vld [vmem:[%s1012_s30 + $0x580] sm:$0xff]  ;;  %567 = vst [vmem:[%s1021_s25 + $0x570] sm:$0xff] %v311_v46  ;;  %568 = vst [vmem:[%s1021_s25 + $0x578] sm:$0xff] %v312_v47  ;;  %v314_v49 = vld [vmem:[%s1012_s30 + $0x588] sm:$0xff] }
  0x8e   : > { %569 = vst [vmem:[%s1021_s25 + $0x580] sm:$0xff] %v313_v48  ;;  %v315_v50 = vld [vmem:[%s1012_s30 + $0x590] sm:$0xff]  ;;  %v316_v51 = vld [vmem:[%s1012_s30 + $0x598] sm:$0xff]  ;;  %570 = vst [vmem:[%s1021_s25 + $0x588] sm:$0xff] %v314_v49 }
  0x8f   : > { %571 = vst [vmem:[%s1021_s25 + $0x590] sm:$0xff] %v315_v50  ;;  %572 = vst [vmem:[%s1021_s25 + $0x598] sm:$0xff] %v316_v51  ;;  %v317_v52 = vld [vmem:[%s1012_s30 + $0x5a0] sm:$0xff]  ;;  %v318_v53 = vld [vmem:[%s1012_s30 + $0x5a8] sm:$0xff] }
  0x90   : > { %v319_v54 = vld [vmem:[%s1012_s30 + $0x5b0] sm:$0xff]  ;;  %573 = vst [vmem:[%s1021_s25 + $0x5a0] sm:$0xff] %v317_v52  ;;  %574 = vst [vmem:[%s1021_s25 + $0x5a8] sm:$0xff] %v318_v53  ;;  %v320_v55 = vld [vmem:[%s1012_s30 + $0x5b8] sm:$0xff] }
  0x91   : > { %575 = vst [vmem:[%s1021_s25 + $0x5b0] sm:$0xff] %v319_v54  ;;  %v321_v56 = vld [vmem:[%s1012_s30 + $0x5c0] sm:$0xff]  ;;  %v322_v57 = vld [vmem:[%s1012_s30 + $0x5c8] sm:$0xff]  ;;  %576 = vst [vmem:[%s1021_s25 + $0x5b8] sm:$0xff] %v320_v55 }
  0x92   : > { %577 = vst [vmem:[%s1021_s25 + $0x5c0] sm:$0xff] %v321_v56  ;;  %578 = vst [vmem:[%s1021_s25 + $0x5c8] sm:$0xff] %v322_v57  ;;  %v323_v58 = vld [vmem:[%s1012_s30 + $0x5d0] sm:$0xff]  ;;  %v324_v59 = vld [vmem:[%s1012_s30 + $0x5d8] sm:$0xff] }
  0x93   : > { %v325_v60 = vld [vmem:[%s1012_s30 + $0x5e0] sm:$0xff]  ;;  %579 = vst [vmem:[%s1021_s25 + $0x5d0] sm:$0xff] %v323_v58  ;;  %580 = vst [vmem:[%s1021_s25 + $0x5d8] sm:$0xff] %v324_v59  ;;  %v326_v61 = vld [vmem:[%s1012_s30 + $0x5e8] sm:$0xff] }
  0x94   : > { %581 = vst [vmem:[%s1021_s25 + $0x5e0] sm:$0xff] %v325_v60  ;;  %v327_v62 = vld [vmem:[%s1012_s30 + $0x5f0] sm:$0xff]  ;;  %v328_v63 = vld [vmem:[%s1012_s30 + $0x5f8] sm:$0xff]  ;;  %582 = vst [vmem:[%s1021_s25 + $0x5e8] sm:$0xff] %v326_v61 }
  0x95   : > { %583 = vst [vmem:[%s1021_s25 + $0x5f0] sm:$0xff] %v327_v62  ;;  %584 = vst [vmem:[%s1021_s25 + $0x5f8] sm:$0xff] %v328_v63  ;;  %v329_v0 = vld [vmem:[%s1012_s30 + $0x600] sm:$0xff]  ;;  %v330_v1 = vld [vmem:[%s1012_s30 + $0x608] sm:$0xff] }
  0x96   : > { %v331_v2 = vld [vmem:[%s1012_s30 + $0x610] sm:$0xff]  ;;  %585 = vst [vmem:[%s1021_s25 + $0x600] sm:$0xff] %v329_v0  ;;  %586 = vst [vmem:[%s1021_s25 + $0x608] sm:$0xff] %v330_v1  ;;  %v332_v3 = vld [vmem:[%s1012_s30 + $0x618] sm:$0xff] }
  0x97   : > { %587 = vst [vmem:[%s1021_s25 + $0x610] sm:$0xff] %v331_v2  ;;  %v333_v4 = vld [vmem:[%s1012_s30 + $0x620] sm:$0xff]  ;;  %v334_v5 = vld [vmem:[%s1012_s30 + $0x628] sm:$0xff]  ;;  %588 = vst [vmem:[%s1021_s25 + $0x618] sm:$0xff] %v332_v3 }
  0x98   : > { %589 = vst [vmem:[%s1021_s25 + $0x620] sm:$0xff] %v333_v4  ;;  %590 = vst [vmem:[%s1021_s25 + $0x628] sm:$0xff] %v334_v5  ;;  %v335_v6 = vld [vmem:[%s1012_s30 + $0x630] sm:$0xff]  ;;  %v336_v7 = vld [vmem:[%s1012_s30 + $0x638] sm:$0xff] }
  0x99   : > { %v337_v8 = vld [vmem:[%s1012_s30 + $0x640] sm:$0xff]  ;;  %591 = vst [vmem:[%s1021_s25 + $0x630] sm:$0xff] %v335_v6  ;;  %592 = vst [vmem:[%s1021_s25 + $0x638] sm:$0xff] %v336_v7  ;;  %v338_v9 = vld [vmem:[%s1012_s30 + $0x648] sm:$0xff] }
  0x9a   : > { %593 = vst [vmem:[%s1021_s25 + $0x640] sm:$0xff] %v337_v8  ;;  %v339_v10 = vld [vmem:[%s1012_s30 + $0x650] sm:$0xff]  ;;  %v340_v11 = vld [vmem:[%s1012_s30 + $0x658] sm:$0xff]  ;;  %594 = vst [vmem:[%s1021_s25 + $0x648] sm:$0xff] %v338_v9 }
  0x9b   : > { %595 = vst [vmem:[%s1021_s25 + $0x650] sm:$0xff] %v339_v10  ;;  %596 = vst [vmem:[%s1021_s25 + $0x658] sm:$0xff] %v340_v11  ;;  %v341_v12 = vld [vmem:[%s1012_s30 + $0x660] sm:$0xff]  ;;  %v342_v13 = vld [vmem:[%s1012_s30 + $0x668] sm:$0xff] }
  0x9c   : > { %v343_v14 = vld [vmem:[%s1012_s30 + $0x670] sm:$0xff]  ;;  %597 = vst [vmem:[%s1021_s25 + $0x660] sm:$0xff] %v341_v12  ;;  %598 = vst [vmem:[%s1021_s25 + $0x668] sm:$0xff] %v342_v13  ;;  %v344_v15 = vld [vmem:[%s1012_s30 + $0x678] sm:$0xff] }
  0x9d   : > { %599 = vst [vmem:[%s1021_s25 + $0x670] sm:$0xff] %v343_v14  ;;  %v345_v16 = vld [vmem:[%s1012_s30 + $0x680] sm:$0xff]  ;;  %v346_v17 = vld [vmem:[%s1012_s30 + $0x688] sm:$0xff]  ;;  %600 = vst [vmem:[%s1021_s25 + $0x678] sm:$0xff] %v344_v15 }
  0x9e   : > { %601 = vst [vmem:[%s1021_s25 + $0x680] sm:$0xff] %v345_v16  ;;  %602 = vst [vmem:[%s1021_s25 + $0x688] sm:$0xff] %v346_v17  ;;  %v347_v18 = vld [vmem:[%s1012_s30 + $0x690] sm:$0xff]  ;;  %v348_v19 = vld [vmem:[%s1012_s30 + $0x698] sm:$0xff] }
  0x9f   : > { %v349_v20 = vld [vmem:[%s1012_s30 + $0x6a0] sm:$0xff]  ;;  %603 = vst [vmem:[%s1021_s25 + $0x690] sm:$0xff] %v347_v18  ;;  %604 = vst [vmem:[%s1021_s25 + $0x698] sm:$0xff] %v348_v19  ;;  %v350_v21 = vld [vmem:[%s1012_s30 + $0x6a8] sm:$0xff] }
  0xa0   : > { %605 = vst [vmem:[%s1021_s25 + $0x6a0] sm:$0xff] %v349_v20  ;;  %v351_v22 = vld [vmem:[%s1012_s30 + $0x6b0] sm:$0xff]  ;;  %v352_v23 = vld [vmem:[%s1012_s30 + $0x6b8] sm:$0xff]  ;;  %606 = vst [vmem:[%s1021_s25 + $0x6a8] sm:$0xff] %v350_v21 }
  0xa1   : > { %607 = vst [vmem:[%s1021_s25 + $0x6b0] sm:$0xff] %v351_v22  ;;  %608 = vst [vmem:[%s1021_s25 + $0x6b8] sm:$0xff] %v352_v23  ;;  %v353_v24 = vld [vmem:[%s1012_s30 + $0x6c0] sm:$0xff]  ;;  %v354_v25 = vld [vmem:[%s1012_s30 + $0x6c8] sm:$0xff] }
  0xa2   : > { %v355_v26 = vld [vmem:[%s1012_s30 + $0x6d0] sm:$0xff]  ;;  %609 = vst [vmem:[%s1021_s25 + $0x6c0] sm:$0xff] %v353_v24  ;;  %610 = vst [vmem:[%s1021_s25 + $0x6c8] sm:$0xff] %v354_v25  ;;  %v356_v27 = vld [vmem:[%s1012_s30 + $0x6d8] sm:$0xff] }
  0xa3   : > { %611 = vst [vmem:[%s1021_s25 + $0x6d0] sm:$0xff] %v355_v26  ;;  %v357_v28 = vld [vmem:[%s1012_s30 + $0x6e0] sm:$0xff]  ;;  %v358_v29 = vld [vmem:[%s1012_s30 + $0x6e8] sm:$0xff]  ;;  %612 = vst [vmem:[%s1021_s25 + $0x6d8] sm:$0xff] %v356_v27 }
  0xa4   : > { %613 = vst [vmem:[%s1021_s25 + $0x6e0] sm:$0xff] %v357_v28  ;;  %614 = vst [vmem:[%s1021_s25 + $0x6e8] sm:$0xff] %v358_v29  ;;  %v359_v30 = vld [vmem:[%s1012_s30 + $0x6f0] sm:$0xff]  ;;  %v360_v31 = vld [vmem:[%s1012_s30 + $0x6f8] sm:$0xff] }
  0xa5   : > { %v361_v32 = vld [vmem:[%s1012_s30 + $0x700] sm:$0xff]  ;;  %615 = vst [vmem:[%s1021_s25 + $0x6f0] sm:$0xff] %v359_v30  ;;  %616 = vst [vmem:[%s1021_s25 + $0x6f8] sm:$0xff] %v360_v31  ;;  %v362_v33 = vld [vmem:[%s1012_s30 + $0x708] sm:$0xff] }
  0xa6   : > { %617 = vst [vmem:[%s1021_s25 + $0x700] sm:$0xff] %v361_v32  ;;  %v363_v34 = vld [vmem:[%s1012_s30 + $0x710] sm:$0xff]  ;;  %v364_v35 = vld [vmem:[%s1012_s30 + $0x718] sm:$0xff]  ;;  %618 = vst [vmem:[%s1021_s25 + $0x708] sm:$0xff] %v362_v33 }
  0xa7   : > { %619 = vst [vmem:[%s1021_s25 + $0x710] sm:$0xff] %v363_v34  ;;  %620 = vst [vmem:[%s1021_s25 + $0x718] sm:$0xff] %v364_v35  ;;  %v365_v36 = vld [vmem:[%s1012_s30 + $0x720] sm:$0xff]  ;;  %v366_v37 = vld [vmem:[%s1012_s30 + $0x728] sm:$0xff] }
  0xa8   : > { %v367_v38 = vld [vmem:[%s1012_s30 + $0x730] sm:$0xff]  ;;  %621 = vst [vmem:[%s1021_s25 + $0x720] sm:$0xff] %v365_v36  ;;  %622 = vst [vmem:[%s1021_s25 + $0x728] sm:$0xff] %v366_v37  ;;  %v368_v39 = vld [vmem:[%s1012_s30 + $0x738] sm:$0xff] }
  0xa9   : > { %623 = vst [vmem:[%s1021_s25 + $0x730] sm:$0xff] %v367_v38  ;;  %v369_v40 = vld [vmem:[%s1012_s30 + $0x740] sm:$0xff]  ;;  %v370_v41 = vld [vmem:[%s1012_s30 + $0x748] sm:$0xff]  ;;  %624 = vst [vmem:[%s1021_s25 + $0x738] sm:$0xff] %v368_v39 }
  0xaa   : > { %625 = vst [vmem:[%s1021_s25 + $0x740] sm:$0xff] %v369_v40  ;;  %626 = vst [vmem:[%s1021_s25 + $0x748] sm:$0xff] %v370_v41  ;;  %v371_v42 = vld [vmem:[%s1012_s30 + $0x750] sm:$0xff]  ;;  %v372_v43 = vld [vmem:[%s1012_s30 + $0x758] sm:$0xff] }
  0xab   : > { %v373_v44 = vld [vmem:[%s1012_s30 + $0x760] sm:$0xff]  ;;  %627 = vst [vmem:[%s1021_s25 + $0x750] sm:$0xff] %v371_v42  ;;  %628 = vst [vmem:[%s1021_s25 + $0x758] sm:$0xff] %v372_v43  ;;  %v374_v45 = vld [vmem:[%s1012_s30 + $0x768] sm:$0xff] }
  0xac   : > { %629 = vst [vmem:[%s1021_s25 + $0x760] sm:$0xff] %v373_v44  ;;  %v375_v46 = vld [vmem:[%s1012_s30 + $0x770] sm:$0xff]  ;;  %v376_v47 = vld [vmem:[%s1012_s30 + $0x778] sm:$0xff]  ;;  %630 = vst [vmem:[%s1021_s25 + $0x768] sm:$0xff] %v374_v45 }
  0xad   : > { %631 = vst [vmem:[%s1021_s25 + $0x770] sm:$0xff] %v375_v46  ;;  %632 = vst [vmem:[%s1021_s25 + $0x778] sm:$0xff] %v376_v47  ;;  %v377_v48 = vld [vmem:[%s1012_s30 + $0x780] sm:$0xff]  ;;  %v378_v49 = vld [vmem:[%s1012_s30 + $0x788] sm:$0xff] }
  0xae   : > { %v379_v50 = vld [vmem:[%s1012_s30 + $0x790] sm:$0xff]  ;;  %633 = vst [vmem:[%s1021_s25 + $0x780] sm:$0xff] %v377_v48  ;;  %634 = vst [vmem:[%s1021_s25 + $0x788] sm:$0xff] %v378_v49  ;;  %v380_v51 = vld [vmem:[%s1012_s30 + $0x798] sm:$0xff] }
  0xaf   : > { %635 = vst [vmem:[%s1021_s25 + $0x790] sm:$0xff] %v379_v50  ;;  %v381_v52 = vld [vmem:[%s1012_s30 + $0x7a0] sm:$0xff]  ;;  %v382_v53 = vld [vmem:[%s1012_s30 + $0x7a8] sm:$0xff]  ;;  %636 = vst [vmem:[%s1021_s25 + $0x798] sm:$0xff] %v380_v51 }
  0xb0   : > { %637 = vst [vmem:[%s1021_s25 + $0x7a0] sm:$0xff] %v381_v52  ;;  %638 = vst [vmem:[%s1021_s25 + $0x7a8] sm:$0xff] %v382_v53  ;;  %v383_v54 = vld [vmem:[%s1012_s30 + $0x7b0] sm:$0xff]  ;;  %v384_v55 = vld [vmem:[%s1012_s30 + $0x7b8] sm:$0xff] }
  0xb1   : > { %v385_v56 = vld [vmem:[%s1012_s30 + $0x7c0] sm:$0xff]  ;;  %639 = vst [vmem:[%s1021_s25 + $0x7b0] sm:$0xff] %v383_v54  ;;  %640 = vst [vmem:[%s1021_s25 + $0x7b8] sm:$0xff] %v384_v55  ;;  %v386_v57 = vld [vmem:[%s1012_s30 + $0x7c8] sm:$0xff] }
  0xb2   : > { %641 = vst [vmem:[%s1021_s25 + $0x7c0] sm:$0xff] %v385_v56  ;;  %v387_v58 = vld [vmem:[%s1012_s30 + $0x7d0] sm:$0xff]  ;;  %v388_v59 = vld [vmem:[%s1012_s30 + $0x7d8] sm:$0xff]  ;;  %642 = vst [vmem:[%s1021_s25 + $0x7c8] sm:$0xff] %v386_v57 }
  0xb3   : > { %643 = vst [vmem:[%s1021_s25 + $0x7d0] sm:$0xff] %v387_v58  ;;  %644 = vst [vmem:[%s1021_s25 + $0x7d8] sm:$0xff] %v388_v59  ;;  %v389_v60 = vld [vmem:[%s1012_s30 + $0x7e0] sm:$0xff]  ;;  %v390_v61 = vld [vmem:[%s1012_s30 + $0x7e8] sm:$0xff] }
  0xb4   : > { %v391_v62 = vld [vmem:[%s1012_s30 + $0x7f0] sm:$0xff]  ;;  %645 = vst [vmem:[%s1021_s25 + $0x7e0] sm:$0xff] %v389_v60  ;;  %646 = vst [vmem:[%s1021_s25 + $0x7e8] sm:$0xff] %v390_v61  ;;  %v392_v63 = vld [vmem:[%s1012_s30 + $0x7f8] sm:$0xff] }
  0xb5   : > { %647 = vst [vmem:[%s1021_s25 + $0x7f0] sm:$0xff] %v391_v62  ;;  %648 = vst [vmem:[%s1021_s25 + $0x7f8] sm:$0xff] %v392_v63 }
  0xb6   : > { %843 = shalt.err (!%p840_p9)
}
  0xb7   : > { %s844_s13 = scalar_lea.hbm %s1526_s29, 32768  ;;  %s848_s20 = scalar_lea.hbm %s1582_s1, 131072 }
  0xb8   : > { %p845_p13 = scmp.ne.s32.totalorder %s1526_s29, %s844_s13  ;;  %p849_p2 = scmp.lt.s32.totalorder %s1526_s29, %s1582_s1 }
  0xb9   : > { %p850_p3 = scmp.lt.s32.totalorder %s848_s20, %s844_s13 }
  0xba   : > { %p846_p1 = pnand %p845_p13, %p1591_p11 }
  0xbb   : > { %p851_p6 = por %p850_p3, %p849_p2 }
  0xbc   : > { %p847_p0 = pneg %p846_p1 }
  0xbe   : > { %p852_p10 = pnand %p851_p6, %p847_p0 }
  0xc0   : > { %855 = shalt.err (!%p852_p10)
}
  0xc1   : > { %s900_s24 = smov 128   ;;  %s901_s26 = smov 8  }
  0xc2   : > { %754 = dma.vmem_to_hbm [thread:$0]  (%p1591_p11), %s1528_s27, 32768, %s1526_s29, %s650_s2, %s900_s24, %s900_s24, %s901_s26  }
  0xc3 PF: > { %p765_p12 = scmp.ge.s32.totalorder %s894_s9, 2  ;;  %s678_s30 = sand.u32 1, %s882_s6  }
  0xc4   : > { %p1592_p4 = scmp.ne.s32.totalorder %s1588_s19, 0  ;;  %s679_s25 = scalar_lea.sflag [#allocation4], %s678_s30 }
  0xc6   : > { %p761_p5 = pnand %p765_p12, %p1592_p4 }
  0xc8   : > { %p762_p7 = pneg %p761_p5 }
  0xca   : > { %877 = dma.done.wait (%p762_p7), %s679_s25, 32768  }
  0xcb   : > { %879 = vsyncadd (%p762_p7), %s679_s25, 4294934528  ;;  %p14_p8 = scmp.ge.s32.totalorder %s937_s12, 6   ;;  %s1593_s6 = smov %s886_s7 }
  0xcc   : > { %s1594_s7 = smov %s890_s8  ;;  %s1595_s8 = smov %s949_s15 }
  0xcd   : > { %s1596_s9 = smov %s937_s12  ;;  %16 = sbr.rel (!%p14_p8) target bundleno = 5 (0x5), region = 69 }
  0xd2   :  { %684 = vsyncpa [#allocation3], 1 }
  0xd3   :  { %686 = vsyncpa [#allocation3 + $0x1], 1 }
  0xd4   :  { %687 = vsyncpa [#allocation4], 1 }
  0xd5   :  { %689 = vsyncpa [#allocation4 + $0x1], 1 }

</bundles_post_ra>
